<compile_context>
chip_gen: v6e
topology: v6e:2x2x1
jax: 0.10.0
libtpu: 0.0.40
codegen_flags: <defaults>
</compile_context>

<pallas_src>
import functools
import math

import jax
import jax.numpy as jnp
from jax.experimental import pallas as pl
from jax.experimental.pallas import tpu as pltpu

IN_FEATURES = 20
HIDDEN = 256
OUT_FEATURES = 10
N_PAD = 128           # lane-dense padded output width (unmasked vst)
SUBLANE = 16          # bf16 sublane packing granularity
MAX_TB = 2048         # max batch tile; ~5 MiB VMEM incl. double buffers -> safe on v7x
MIN_GRID_STEPS = 4    # keep >=2 steps per TensorCore on v7x when the batch allows
SMALL_BATCH = 1024    # below this, a plain fused jnp expression beats the kernel


def _round_up(x, m):
    return -(-x // m) * m


def _mlp_kernel(x_ref, w1_ref, b1_ref, w2_ref, b2_ref, o_ref, *, bf16_epilogue):
    # x arrives f32; cast to bf16 here (VPU) so the wrapper doesn't re-stream x via HBM.
    x = x_ref[...].astype(jnp.bfloat16)
    h = jnp.dot(x, w1_ref[...], preferred_element_type=jnp.float32)
    if bf16_epilogue:
        # v6e/v7x have a bf16 VALU: bias-add + ReLU in bf16 halves the (tb,256)
        # intermediate that flows through the vst/vld slots.
        hb = jnp.maximum(h.astype(jnp.bfloat16) + b1_ref[...].astype(jnp.bfloat16),
                         jnp.bfloat16(0))
        y = jnp.dot(hb, w2_ref[...], preferred_element_type=jnp.float32)
    else:
        # v5e has no bf16 VALU: keep the epilogue in f32, cast only for the MXU.
        hf = jnp.maximum(h + b1_ref[...], 0.0)
        y = jnp.dot(hf.astype(jnp.bfloat16), w2_ref[...],
                    preferred_element_type=jnp.float32)
    o_ref[...] = (y + b2_ref[...]).astype(o_ref.dtype)


def prepare_params(w1, b1, w2, b2):
    """One-time pad/cast of the parameters. Call once, reuse across forward calls."""
    w1b = w1.astype(jnp.bfloat16)                                                  # (20, 256)
    w2b = jnp.pad(w2, ((0, 0), (0, N_PAD - OUT_FEATURES))).astype(jnp.bfloat16)    # (256, 128)
    b1f = b1.reshape(1, HIDDEN).astype(jnp.float32)                                # (1, 256)
    b2f = jnp.pad(b2.reshape(1, OUT_FEATURES),
                  ((0, 0), (0, N_PAD - OUT_FEATURES))).astype(jnp.float32)         # (1, 128)
    return w1b, b1f, w2b, b2f


def _default_bf16_epilogue():
    try:
        kind = jax.devices()[0].device_kind.lower()
    except Exception:
        return True
    return "v5" not in kind  # keep the f32 epilogue on v5e (no bf16 VALU)


def _pick_tile(b_sub):
    """Largest tile <= MAX_TB, shrunk (to a sublane multiple) to keep >= MIN_GRID_STEPS."""
    tb = min(MAX_TB, b_sub)
    if b_sub // tb < MIN_GRID_STEPS and b_sub > SUBLANE:
        tb = min(tb, max(SUBLANE, _round_up(-(-b_sub // MIN_GRID_STEPS), SUBLANE)))
    return tb


def mlp_forward(x, params, *, use_pallas=None, return_padded=False, bf16_epilogue=None):
    """x: (B, 20) f32, params from prepare_params() -> (B, 10) bf16 (or padded slab)."""
    w1b, b1f, w2b, b2f = params
    B = x.shape[0]

    if use_pallas is None:
        use_pallas = B >= SMALL_BATCH
    if not use_pallas:
        # Small-batch fast path: fused XLA dots with the same bf16 matmul numerics.
        h = jnp.maximum(
            jnp.dot(x.astype(jnp.bfloat16), w1b, preferred_element_type=jnp.float32) + b1f,
            0.0)
        y = jnp.dot(h.astype(jnp.bfloat16), w2b, preferred_element_type=jnp.float32) + b2f
        y = y.astype(jnp.bfloat16)
        return y if return_padded else y[:B, :OUT_FEATURES]

    if bf16_epilogue is None:
        bf16_epilogue = _default_bf16_epilogue()

    # Pad the batch to a sublane multiple, pick a tile, then pad to a tile multiple.
    b_sub = _round_up(max(B, SUBLANE), SUBLANE)
    tb = _pick_tile(b_sub)
    b_pad = _round_up(b_sub, tb)
    if b_pad != B:
        x = jnp.pad(x, ((0, b_pad - B), (0, 0)))

    grid = (b_pad // tb,)
    flops = 2 * b_pad * (IN_FEATURES * HIDDEN + HIDDEN * N_PAD)
    bytes_accessed = (
        x.size * 4                                  # f32 x in
        + w1b.size * 2 + w2b.size * 2               # bf16 resident weights
        + b1f.size * 4 + b2f.size * 4               # f32 biases
        + b_pad * N_PAD * 2                         # bf16 output
    )

    out = pl.pallas_call(
        functools.partial(_mlp_kernel, bf16_epilogue=bf16_epilogue),
        out_shape=jax.ShapeDtypeStruct((b_pad, N_PAD), jnp.bfloat16),
        grid=grid,
        in_specs=[
            pl.BlockSpec((tb, IN_FEATURES), lambda i: (i, 0)),       # x (f32): tiled over batch
            pl.BlockSpec((IN_FEATURES, HIDDEN), lambda i: (0, 0)),   # W1 bf16: VMEM-resident
            pl.BlockSpec((1, HIDDEN), lambda i: (0, 0)),             # b1 f32: VMEM-resident
            pl.BlockSpec((HIDDEN, N_PAD), lambda i: (0, 0)),         # W2 bf16 (padded): resident
            pl.BlockSpec((1, N_PAD), lambda i: (0, 0)),              # b2 f32 (padded): resident
        ],
        out_specs=pl.BlockSpec((tb, N_PAD), lambda i: (i, 0)),
        compiler_params=pltpu.CompilerParams(
            dimension_semantics=("parallel",),
            vmem_limit_bytes=32 * 1024 * 1024,      # safe for v7x's smaller VMEM
        ),
        cost_estimate=pl.CostEstimate(
            flops=flops, transcendentals=0, bytes_accessed=bytes_accessed
        ),
    )(x, w1b, b1f, w2b, b2f)

    if return_padded:
        return out                                   # (b_pad, 128) bf16 slab, no extra copy
    return out[:B, :OUT_FEATURES]


def init_params(key):
    """Deterministic init mimicking nn.Linear's U(-1/sqrt(fan_in), 1/sqrt(fan_in))."""
    k1, k2, k3, k4 = jax.random.split(key, 4)
    bound1 = 1.0 / math.sqrt(IN_FEATURES)
    bound2 = 1.0 / math.sqrt(HIDDEN)
    w1 = jax.random.uniform(k1, (IN_FEATURES, HIDDEN), jnp.float32, -bound1, bound1)
    b1 = jax.random.uniform(k2, (1, HIDDEN), jnp.float32, -bound1, bound1)
    w2 = jax.random.uniform(k3, (HIDDEN, OUT_FEATURES), jnp.float32, -bound2, bound2)
    b2 = jax.random.uniform(k4, (1, OUT_FEATURES), jnp.float32, -bound2, bound2)
    return w1, b1, w2, b2


if __name__ == "__main__":
    key = jax.random.PRNGKey(0)
    kx, kp = jax.random.split(key)

    # The reference module runs on a single length-20 vector; keep a tiny batch here and
    # force the Pallas path so the kernel is exercised (auto mode would take the fast path).
    batch = 2
    x = jax.random.uniform(kx, (batch, IN_FEATURES), jnp.float32)  # like torch.rand
    w1, b1, w2, b2 = init_params(kp)
    params = prepare_params(w1, b1, w2, b2)

    out = mlp_forward(x, params, use_pallas=True)
    out = jax.block_until_ready(out)

    # Plain-JAX reference with the same bf16-rounded matmul operands (f32 accumulate);
    # tolerance covers bf16 mantissa loss in operands, epilogue and output.
    xb = x.astype(jnp.bfloat16).astype(jnp.float32)
    w1r = w1.astype(jnp.bfloat16).astype(jnp.float32)
    w2r = w2.astype(jnp.bfloat16).astype(jnp.float32)
    h_ref = jnp.maximum(xb @ w1r + b1, 0.0)
    ref = h_ref.astype(jnp.bfloat16).astype(jnp.float32) @ w2r + b2

    assert out.shape == (batch, OUT_FEATURES)
    assert out.dtype == jnp.bfloat16
    assert jnp.allclose(out.astype(jnp.float32), ref, atol=2e-2, rtol=2e-2)

    print("KERNEL_OK")
</pallas_src>

<mosaic_0001>
module attributes {stable_mosaic.version = 11 : i64} {
  func.func @_mlp_kernel(%arg0: i32, %arg1: memref<16x20xf32, #tpu.memory_space<vmem>>, %arg2: memref<20x256xbf16, #tpu.memory_space<vmem>>, %arg3: memref<1x256xf32, #tpu.memory_space<vmem>>, %arg4: memref<256x128xbf16, #tpu.memory_space<vmem>>, %arg5: memref<1x128xf32, #tpu.memory_space<vmem>>, %arg6: memref<16x128xbf16, #tpu.memory_space<vmem>>) attributes {dimension_semantics = [#tpu.dimension_semantics<parallel>], iteration_bounds = array<i64: 1>, scalar_prefetch = 0 : i64, scratch_operands = 0 : i64, tpu.core_type = #tpu.core_type<tc>, window_params = [{transform_indices = @transform_0, window_bounds = array<i64: 16, 20>}, {pipeline_mode = #tpu.pipeline_mode<synchronous>, transform_indices = @transform_1, window_bounds = array<i64: 20, 256>}, {pipeline_mode = #tpu.pipeline_mode<synchronous>, transform_indices = @transform_2, window_bounds = array<i64: 1, 256>}, {pipeline_mode = #tpu.pipeline_mode<synchronous>, transform_indices = @transform_3, window_bounds = array<i64: 256, 128>}, {pipeline_mode = #tpu.pipeline_mode<synchronous>, transform_indices = @transform_4, window_bounds = array<i64: 1, 128>}, {transform_indices = @transform_5, window_bounds = array<i64: 16, 128>}]} {
    %c0 = arith.constant 0 : index
    %c0_0 = arith.constant 0 : index
    %0 = vector.load %arg1[%c0, %c0_0] : memref<16x20xf32, #tpu.memory_space<vmem>>, vector<16x20xf32>
    %1 = arith.truncf %0 : vector<16x20xf32> to vector<16x20xbf16>
    %c0_1 = arith.constant 0 : index
    %c0_2 = arith.constant 0 : index
    %2 = vector.load %arg2[%c0_1, %c0_2] : memref<20x256xbf16, #tpu.memory_space<vmem>>, vector<20x256xbf16>
    %cst = arith.constant dense<0.000000e+00> : vector<16x256xf32>
    %3 = tpu.matmul %1, %2, %cst {dimension_numbers = #tpu.dot_dimension_numbers<[1], [0], [0], [1], [0, 0, 1, 1], [], []>} : vector<16x20xbf16>, vector<20x256xbf16>, vector<16x256xf32> -> vector<16x256xf32>
    %4 = arith.truncf %3 : vector<16x256xf32> to vector<16x256xbf16>
    %c0_3 = arith.constant 0 : index
    %c0_4 = arith.constant 0 : index
    %5 = vector.load %arg3[%c0_3, %c0_4] : memref<1x256xf32, #tpu.memory_space<vmem>>, vector<1x256xf32>
    %6 = arith.truncf %5 : vector<1x256xf32> to vector<1x256xbf16>
    %7 = vector.broadcast %6 : vector<1x256xbf16> to vector<16x256xbf16>
    %8 = arith.addf %4, %7 : vector<16x256xbf16>
    %cst_5 = arith.constant 0.000000e+00 : bf16
    %9 = vector.broadcast %cst_5 : bf16 to vector<16x256xbf16>
    %10 = arith.maximumf %8, %9 : vector<16x256xbf16>
    %c0_6 = arith.constant 0 : index
    %c0_7 = arith.constant 0 : index
    %11 = vector.load %arg4[%c0_6, %c0_7] : memref<256x128xbf16, #tpu.memory_space<vmem>>, vector<256x128xbf16>
    %cst_8 = arith.constant dense<0.000000e+00> : vector<16x128xf32>
    %12 = tpu.matmul %10, %11, %cst_8 {dimension_numbers = #tpu.dot_dimension_numbers<[1], [0], [0], [1], [0, 0, 1, 1], [], []>} : vector<16x256xbf16>, vector<256x128xbf16>, vector<16x128xf32> -> vector<16x128xf32>
    %c0_9 = arith.constant 0 : index
    %c0_10 = arith.constant 0 : index
    %13 = vector.load %arg5[%c0_9, %c0_10] : memref<1x128xf32, #tpu.memory_space<vmem>>, vector<1x128xf32>
    %14 = vector.broadcast %13 : vector<1x128xf32> to vector<16x128xf32>
    %15 = arith.addf %12, %14 : vector<16x128xf32>
    %16 = arith.truncf %15 : vector<16x128xf32> to vector<16x128xbf16>
    %c0_11 = arith.constant 0 : index
    %c0_12 = arith.constant 0 : index
    %17 = vector.load %arg6[%c0_11, %c0_12] : memref<16x128xbf16, #tpu.memory_space<vmem>>, vector<16x128xbf16>
    tpu.vector_store %arg6[%c0_11, %c0_12], %16 {strides = array<i32>} : memref<16x128xbf16, #tpu.memory_space<vmem>>, vector<16x128xbf16>,
    return
  }
  func.func @transform_0(%arg0: i32) -> (i32, i32) {
    %c0_i32 = arith.constant 0 : i32
    %c0_i32_0 = arith.constant 0 : i32
    return %arg0, %c0_i32 : i32, i32
  }
  func.func @transform_1(%arg0: i32) -> (i32, i32) {
    %c0_i32 = arith.constant 0 : i32
    %c0_i32_0 = arith.constant 0 : i32
    %c0_i32_1 = arith.constant 0 : i32
    return %c0_i32, %c0_i32_0 : i32, i32
  }
  func.func @transform_2(%arg0: i32) -> (i32, i32) {
    %c0_i32 = arith.constant 0 : i32
    %c0_i32_0 = arith.constant 0 : i32
    %c0_i32_1 = arith.constant 0 : i32
    return %c0_i32, %c0_i32_0 : i32, i32
  }
  func.func @transform_3(%arg0: i32) -> (i32, i32) {
    %c0_i32 = arith.constant 0 : i32
    %c0_i32_0 = arith.constant 0 : i32
    %c0_i32_1 = arith.constant 0 : i32
    return %c0_i32, %c0_i32_0 : i32, i32
  }
  func.func @transform_4(%arg0: i32) -> (i32, i32) {
    %c0_i32 = arith.constant 0 : i32
    %c0_i32_0 = arith.constant 0 : i32
    %c0_i32_1 = arith.constant 0 : i32
    return %c0_i32, %c0_i32_0 : i32, i32
  }
  func.func @transform_5(%arg0: i32) -> (i32, i32) {
    %c0_i32 = arith.constant 0 : i32
    %c0_i32_0 = arith.constant 0 : i32
    return %arg0, %c0_i32 : i32, i32
  }
}

</mosaic_0001>

<bundles_post_ra>
// kernel: tpu_custom_call.1
= control target key start
LH: loop header
LB: loop body
LE: loop exit
PB: predicated region body
PF: predicated region fallthrough
CT: control target
= control target key end

     0   :  { %10 = vsyncpa [#allocation3], 0  ;;  %s612_s0 = inlined_call_operand.hbm [shape: f32[16,20], index: 0, kind: input, shape index: {}]   ;;  %s613_s1 = inlined_call_operand.hbm [shape: bf16[20,256], index: 1, kind: input, shape index: {}]   ;;  %s614_s2 = inlined_call_operand.vmem [shape: f32[1,256], index: 2, kind: input, shape index: {}]   ;;  %s615_s3 = inlined_call_operand.hbm [shape: bf16[256,128], index: 3, kind: input, shape index: {}]   ;;  %s616_s4 = inlined_call_operand.vmem [shape: f32[1,128], index: 4, kind: input, shape index: {}]   ;;  %s617_s5 = inlined_call_operand.hbm [shape: bf16[16,128], index: 5, kind: output, shape index: {}]  }
   0x1   :  { %11 = vsyncpa [#allocation6], 0 }
   0x2   :  { %12 = vsyncpa [#allocation4], 0  ;;  %s546_s18 = smov [#allocation5]   ;;  %s547_s20 = smov [#allocation2]  }
   0x3   :  { %s30_s19 = sshll.u32 %s546_s18, 4  ;;  %s18_s21 = sshll.u32 %s547_s20, 4  ;;  %s31_s19 = int_to_ptr.vmem [resolvable:$true] %s30_s19  ;;  %s19_s21 = int_to_ptr.vmem [resolvable:$true] %s18_s21 }
   0x4   :  { %s468_s22 = scalar_lea.vmem %s31_s19, 384  ;;  %p473_p1 = scmp.lt.s32.totalorder %s31_s19, %s31_s19 }
   0x5   :  { %p469_p0 = scmp.ne.s32.totalorder %s31_s19, %s468_s22  ;;  %p474_p2 = scmp.lt.s32.totalorder %s468_s22, %s468_s22 }
   0x7   :  { %p475_p3 = por %p474_p2, %p473_p1 }
   0x9   :  { %p476_p4 = pnand %p475_p3, %p469_p0 }
   0xb   :  { %479 = shalt.err (!%p476_p4)
}
   0xc   :  { %s548_s23 = smov 128   ;;  %s549_s24 = smov 8  }
   0xd   :  { %36 = dma.hbm_to_vmem [thread:$0]  %s613_s1, 384, %s31_s19, [#allocation6], %s548_s23, %s548_s23, %s549_s24  }
   0xe   :  { %s488_s27 = scalar_lea.vmem %s19_s21, 256  ;;  %p493_p6 = scmp.lt.s32.totalorder %s19_s21, %s19_s21 }
   0xf   :  { %p489_p5 = scmp.ne.s32.totalorder %s19_s21, %s488_s27  ;;  %p494_p7 = scmp.lt.s32.totalorder %s488_s27, %s488_s27 }
  0x11   :  { %p495_p8 = por %p494_p7, %p493_p6 }
  0x13   :  { %p496_p9 = pnand %p495_p8, %p489_p5 }
  0x15   :  { %499 = shalt.err (!%p496_p9)
}
  0x16   :  { %24 = dma.hbm_to_vmem [thread:$0]  %s612_s0, 256, %s19_s21, [#allocation3], %s548_s23, %s548_s23, %s549_s24  }
  0x17   :  { %s550_s30 = smov [#allocation7]  }
  0x18   :  { %s44_s6 = sshll.u32 %s550_s30, 4  ;;  %s45_s6 = int_to_ptr.vmem [resolvable:$true] %s44_s6 }
  0x19   :  { %s508_s7 = scalar_lea.vmem %s45_s6, 2048  ;;  %p513_p11 = scmp.lt.s32.totalorder %s45_s6, %s45_s6 }
  0x1a   :  { %p509_p10 = scmp.ne.s32.totalorder %s45_s6, %s508_s7  ;;  %p514_p12 = scmp.lt.s32.totalorder %s508_s7, %s508_s7 }
  0x1c   :  { %p515_p13 = por %p514_p12, %p513_p11 }
  0x1e   :  { %p516_p0 = pnand %p515_p13, %p509_p10 }
  0x20   :  { %519 = shalt.err (!%p516_p0)
}
  0x21   :  { %s551_s1 = smov 64   ;;  %s552_s8 = smov 4  }
  0x22   :  { %50 = dma.hbm_to_vmem [thread:$0]  %s615_s3, 2048, %s45_s6, [#allocation6], %s551_s1, %s551_s1, %s552_s8  }
  0x23   :  { %540 = dma.done.wait [#allocation3], 256  }
  0x24   :  { %541 = vsyncadd [#allocation3], 4294967040 }
  0x25   :  { %542 = dma.done.wait [#allocation6], 2432  }
  0x26   :  { %543 = vsyncadd [#allocation6], 4294964864  ;;  %v553_v0 = vmov 0   ;;  %v68_v1 = vld [vmem:[#allocation5 + $0x10] sm:$0x33]  ;;  %vm88_vm0 = vcmask 1041408   ;;  %v142_v26 = vlaneseq }
  0x27   :  { %127 = vmatprep.mubr.bf16.mxu0 %v553_v0  ;;  %v379_v2 = vcombine.high %v68_v1, %v68_v1  ;;  %v378_v3 = vcombine.low %v68_v1, %v68_v1  ;;  %v441_v4 = vld [vmem:[#allocation5 + $0x4] ss:$8 sps:$4 sm:$0xff]   ;;  %v443_v5 = vld [vmem:[#allocation5] ss:$8 sps:$4 sm:$0xff]   ;;  %v63_v6 = vld [vmem:[#allocation2] sm:$0xff]  ;;  %vm84_vm1 = vcmask 162816  }
  0x28   :  { %v64_v7 = vld [vmem:[#allocation2 + $0x8] sm:$0xff]  ;;  %v444_v9 = vld [vmem:[#allocation7 + $0x78] sm:$0xff]   ;;  %v446_v11 = vld [vmem:[#allocation7 + $0x70] sm:$0xff]   ;;  %v143_v27 = vshrl.u32 %v142_v26, 7  ;;  %s554_s12 = smov [#allocation8]  }
  0x29   :  { %380 = vmatprep.subr.msk.bf16.mxu0 %vm88_vm0, %v379_v2  ;;  %v90_v8 = vsel %vm88_vm0, %v378_v3, 0  ;;  %v445_v10 = vld [vmem:[#allocation7 + $0x38] sm:$0xff]   ;;  %408 = vmatprep.subr.bf16.mxu1 %v444_v9  ;;  %v447_v12 = vld [vmem:[#allocation7 + $0x30] sm:$0xff]   ;;  %v65_v13 = vpack.c.bf16 %v64_v7, %v63_v6  ;;  %v448_v14 = vld [vmem:[#allocation7 + $0x68] sm:$0xff]   ;;  %s363_s13 = sshll.u32 %s554_s12, 4  ;;  %s364_s13 = int_to_ptr.vmem [resolvable:$true] %s363_s13 }
  0x2a   :  { %108 = vmatpush1.bf16.msra.mxu0 %v90_v8  ;;  %409 = vmatpush3.bf16.msra.mxu1 %v445_v10  ;;  %v449_v15 = vld [vmem:[#allocation7 + $0x28] sm:$0xff]   ;;  %v450_v16 = vld [vmem:[#allocation7 + $0x60] sm:$0xff]   ;;  %v452_v18 = vld [vmem:[#allocation7 + $0x58] sm:$0xff]   ;;  %v144_v28 = vsub.s32 0, %v143_v27  ;;  %v148_v30 = vsub.s32 1, %v143_v27  ;;  %s520_s14 = scalar_lea.vmem %s364_s13, 128  ;;  %p525_p2 = scmp.lt.s32.totalorder %s364_s13, %s364_s13 }
  0x2b   :  { %109 = vmatprep.subr.bf16.mxu0 %v441_v4  ;;  %410 = vmatprep.subr.bf16.mxu1 %v446_v11  ;;  %v451_v17 = vld [vmem:[#allocation7 + $0x20] sm:$0xff]   ;;  %v453_v19 = vld [vmem:[#allocation7 + $0x18] sm:$0xff]   ;;  %v454_v20 = vld [vmem:[#allocation7 + $0x50] sm:$0xff]   ;;  %p521_p1 = scmp.ne.s32.totalorder %s364_s13, %s520_s14  ;;  %p526_p3 = scmp.lt.s32.totalorder %s520_s14, %s520_s14 }
  0x2c   :  { %v455_v21 = vld [vmem:[#allocation7 + $0x10] sm:$0xff]   ;;  %v456_v22 = vld [vmem:[#allocation7 + $0x48] sm:$0xff]   ;;  %v458_v24 = vld [vmem:[#allocation7 + $0x40] sm:$0xff]  }
  0x2d   :  { %v457_v23 = vld [vmem:[#allocation7 + $0x8] sm:$0xff]   ;;  %v459_v25 = vld [vmem:[#allocation7] sm:$0xff]   ;;  %v140_v29 = vld [vmem:[%s614_s2] sm:$0x3]  ;;  %p527_p4 = por %p526_p3, %p525_p2 }
  0x2e   :  { %110 = vmatpush1.bf16.msra.mxu0 %v443_v5  ;;  %411 = vmatpush3.bf16.msra.mxu1 %v447_v12  ;;  %v145_v31 = vrot.slane %v140_v29, %v144_v28  ;;  %v149_v32 = vrot.slane %v140_v29, %v148_v30  ;;  %v382_v53 = vld [vmem:[%s616_s4] ss:$0 sm:$0xff] }
  0x2f   :  { %412 = vmatprep.subr.bf16.mxu1 %v448_v14  ;;  %p528_p5 = pnand %p527_p4, %p521_p1 }
  0x30   :  { %v152_v33 = vpack.c.bf16 %v145_v31, %v145_v31  ;;  %v153_v34 = vpack.c.bf16 %v149_v32, %v149_v32 }
  0x31   :  { %381 = vmatmul.mubr.msk.bf16.vlgmr.msra.gmra.mxu0 %vm84_vm1, %v65_v13 }
  0x32   :  { %413 = vmatpush3.bf16.msra.mxu1 %v449_v15  ;;  %v155_v36 = vpack.i.b16 %v152_v33, %v152_v33  ;;  %v162_v37 = vpack.i.b16 %v153_v34, %v153_v34 }
  0x33   :  { %414 = vmatprep.subr.bf16.mxu1 %v450_v16 }
  0x34   :  { %v160_v40 = vrot.slane %v155_v36, %v144_v28  ;;  %v167_v42 = vrot.slane %v162_v37, %v144_v28 }
  0x36   :  { %415 = vmatpush3.bf16.msra.mxu1 %v451_v17 }
  0x37   :  { %416 = vmatprep.subr.bf16.mxu1 %v452_v18 }
  0x3a   :  { %417 = vmatpush3.bf16.msra.mxu1 %v453_v19 }
  0x3b   :  { %418 = vmatprep.subr.bf16.mxu1 %v454_v20 }
  0x3e   :  { %419 = vmatpush3.bf16.msra.mxu1 %v455_v21 }
  0x3f   :  { %420 = vmatprep.subr.bf16.mxu1 %v456_v22 }
  0x42   :  { %421 = vmatpush3.bf16.msra.mxu1 %v457_v23 }
  0x43   :  { %422 = vmatprep.subr.bf16.mxu1 %v458_v24 }
  0x46   :  { %423 = vmatpush3.bf16.msra.mxu1 %v459_v25 }
  0xf1   :  { %v129_v35 = vpop.f32.mrf.mxu0 }
  0xf3   :  { %v131_v38 = vpop.f32.mrf.mxu0 }
  0xf5   :  { %v133_v39 = vpop.f32.mrf.mxu0 }
  0xf6   :  { %v138_v41 = vpack.c.bf16 %v133_v39, %v129_v35 }
  0xf7   :  { %v135_v43 = vpop.f32.mrf.mxu0 }
  0xf8   :  { %v139_v44 = vpack.c.bf16 %v135_v43, %v131_v38  ;;  %v168_v45 = vadd.bf16 %v160_v40, %v138_v41 }
  0xfa   :  { %v169_v46 = vadd.bf16 %v167_v42, %v139_v44  ;;  %v170_v48 = vmax.bf16 %v553_v0, %v168_v45 }
  0xfc   :  { %v171_v47 = vmax.bf16 %v553_v0, %v169_v46 }
  0xfe   :  { %339 = vmatprep.mubr.bf16.mxu1 %v171_v47 }
  0xff   :  { %340 = vmatmul.mubr.bf16.vlgmr.msra.gmra.mxu1 %v170_v48 }
 0x1bf   :  { %v424_v49 = vpop.f32.mrf.mxu1 }
 0x1c1   :  { %v425_v50 = vpop.f32.mrf.mxu1 }
 0x1c2   :  { %v426_v52 = vadd.f32 %v425_v50, %v424_v49 }
 0x1c3   :  { %v427_v51 = vpop.f32.mrf.mxu1 }
 0x1c4   :  { %v342_v56 = vadd.f32 %v426_v52, %v382_v53 }
 0x1c5   :  { %v428_v54 = vpop.f32.mrf.mxu1 }
 0x1c6   :  { %v429_v55 = vadd.f32 %v428_v54, %v427_v51 }
 0x1c8   :  { %v345_v57 = vadd.f32 %v429_v55, %v382_v53 }
 0x1ca   :  { %v406_v58 = vpack.c.bf16 %v345_v57, %v342_v56 }
 0x1cc   :  { %407 = vst [vmem:[#allocation8] sm:$0xff] %v406_v58  }
 0x1cd   :  { %531 = shalt.err (!%p528_p5)
}
 0x1ce   :  { %369 = dma.vmem_to_hbm [thread:$0]  %s364_s13, 128, %s617_s5, [#allocation4], %s551_s1, %s551_s1, %s552_s8  }
 0x1cf   :  { %544 = dma.done.wait [#allocation4], 128  }
 0x1d0   :  { %545 = vsyncadd [#allocation4], 4294967168 }
 0x1d1   :  { %373 = vsyncpa [#allocation3], 1 }
 0x1d2   :  { %374 = vsyncpa [#allocation6], 1 }
 0x1d3   :  { %375 = vsyncpa [#allocation4], 1 }

</bundles_post_ra>
